<compile_context>
chip_gen: v6e
topology: v6e:2x2x1
jax: 0.10.0
libtpu: 0.0.40
codegen_flags: <defaults>
</compile_context>

<pallas_src>
import functools

import jax
import jax.numpy as jnp
from jax.experimental import pallas as pl
from jax.experimental.pallas import tpu as pltpu

_LANE = 128
_SUBLANE = 8


def _round_up(x, m):
    return (x + m - 1) // m * m


def _pad_to(a, shape):
    return jnp.pad(a, [(0, t - s) for s, t in zip(a.shape, shape)])


def _device_kind():
    try:
        return str(getattr(jax.devices()[0], "device_kind", "")).lower()
    except Exception:
        return ""


def _num_tensorcores():
    # v7x has 2 TensorCores per chip (the "parallel" grid axis is sharded
    # across them); v5e/v6e have a single TensorCore.
    return 2 if "v7" in _device_kind() else 1


def _bf16_activations_ok():
    # v6e/v7x VPU/EUP have a bf16 path; v5e (and older) do not.
    k = _device_kind()
    return ("v6" in k) or ("v7" in k)


def _vmem_capacity_bytes():
    try:
        cap = int(getattr(pltpu.get_tpu_info(), "vmem_capacity_bytes", 0))
        if cap > 0:
            return cap
    except Exception:
        pass
    return 64 << 20  # conservative default: v7x per-TensorCore VMEM


def _choose_row_tile(M, num_cores):
    """Generation/size-aware row tile.

    * Single-TensorCore parts (v5e/v6e): one grid step for small/medium M
      (each extra step costs ~0.35us and there is no second core to feed);
      512-row tiles (multiple of 256 for MXU row fill) once M is large.
    * v7x megacore: >= 2 grid steps with an even step count so both
      TensorCores get equal work.
    """
    M8 = _round_up(M, _SUBLANE)
    if num_cores <= 1:
        return M8 if M8 <= 1024 else 512
    steps = max(2, 2 * pl.cdiv(M8, 1024))  # even, >= 2
    return max(_SUBLANE, min(512, _round_up(pl.cdiv(M8, steps), _SUBLANE)))


def mlp_kernel(x_ref, w1_ref, b1_ref, w2_ref, b2_ref, w3_ref, b3_ref, o_ref,
               *, matmul_dtype, act_dtype):
    # Rows are fully independent: there is NO cross-row reduction anywhere in
    # this kernel, so the out-of-bounds rows of the last partial block are
    # harmless (and never written back).
    x = jnp.tanh(x_ref[...].astype(act_dtype))                     # input tanh

    # fc1 + tanh: low-precision MXU operands, f32 accumulation, f32 bias add,
    # activation in act_dtype (bf16 on v6e/v7x perf path, else f32).
    h1 = jnp.dot(x.astype(matmul_dtype), w1_ref[...],
                 preferred_element_type=jnp.float32) + b1_ref[...]
    h1 = jnp.tanh(h1.astype(act_dtype))

    # fc2 + tanh
    h2 = jnp.dot(h1.astype(matmul_dtype), w2_ref[...],
                 preferred_element_type=jnp.float32) + b2_ref[...]
    h2 = jnp.tanh(h2.astype(act_dtype))

    # fc3 + sigmoid (output feature dim is unpadded)
    h3 = jnp.dot(h2.astype(matmul_dtype), w3_ref[...],
                 preferred_element_type=jnp.float32) + b3_ref[...]
    o_ref[...] = jax.nn.sigmoid(h3.astype(act_dtype)).astype(o_ref.dtype)


def prepare_params(params, *, matmul_dtype=jnp.bfloat16):
    """Pad/cast the weights ONCE; cache the result across forward calls.

    Hidden dims are lane-padded to multiples of 128.  The zero padding is
    load-bearing for correctness: padded OUTPUT columns of w1/w2 and padded
    lanes of b1/b2 are zero, so padded hidden lanes stay exactly tanh(0)=0,
    and padded INPUT rows of w2/w3 are zero, so those lanes can never
    contaminate real outputs.  Do not change the padding value or switch to an
    activation with f(0) != 0 without revisiting this.
    """
    w1, b1 = params["w1"], params["b1"]   # (D_in, H1), (1, H1)
    w2, b2 = params["w2"], params["b2"]   # (H1, H2),  (1, H2)
    w3, b3 = params["w3"], params["b3"]   # (H2, D_out), (1, D_out)
    D_in, H1 = w1.shape
    H2, D_out = w3.shape
    H1p = _round_up(H1, _LANE)
    H2p = _round_up(H2, _LANE)
    return {
        "w1": _pad_to(w1, (D_in, H1p)).astype(matmul_dtype),
        "b1": _pad_to(b1, (1, H1p)).astype(jnp.float32),
        "w2": _pad_to(w2, (H1p, H2p)).astype(matmul_dtype),
        "b2": _pad_to(b2, (1, H2p)).astype(jnp.float32),
        "w3": _pad_to(w3, (H2p, D_out)).astype(matmul_dtype),  # D_out unpadded
        "b3": b3.astype(jnp.float32),
    }


def mlp_forward(x, prepared, *, row_tile=None):
    """x: (B, S, D_in).  prepared: output of prepare_params()."""
    B, S, D_in = x.shape
    M = B * S
    w1, b1 = prepared["w1"], prepared["b1"]
    w2, b2 = prepared["w2"], prepared["b2"]
    w3, b3 = prepared["w3"], prepared["b3"]
    assert w1.shape[0] == D_in, "prepared params do not match x feature dim"
    H1p, H2p, D_out = w1.shape[1], w2.shape[1], w3.shape[1]

    matmul_dtype = w1.dtype
    exact = matmul_dtype == jnp.float32
    act_dtype = (jnp.bfloat16 if (not exact and _bf16_activations_ok())
                 else jnp.float32)

    num_cores = _num_tensorcores()
    if row_tile is None:
        tm = _choose_row_tile(M, num_cores)
    else:
        assert row_tile % _SUBLANE == 0, "row_tile must be a multiple of 8"
        tm = row_tile
    grid = (pl.cdiv(M, tm),)

    # Stream x in bf16 on the low-precision path (halves the x HBM read); the
    # exact f32 path keeps f32 so the tight-tolerance check still holds.
    x_stream_dtype = jnp.float32 if exact else jnp.bfloat16
    x2d = x.reshape(M, D_in).astype(x_stream_dtype)

    wbytes = jnp.dtype(matmul_dtype).itemsize
    xbytes = jnp.dtype(x_stream_dtype).itemsize
    weight_bytes = (w1.size + w2.size + w3.size) * wbytes
    bias_bytes = (b1.size + b2.size + b3.size) * 4

    cost = pl.CostEstimate(
        flops=2 * M * (D_in * H1p + H1p * H2p + H2p * D_out),
        transcendentals=M * (D_in + H1p + H2p + D_out),
        bytes_accessed=(M * D_in * xbytes + weight_bytes + bias_bytes
                        + M * D_out * 4),
    )

    # Per-step VMEM: double-buffered x and out tiles, single-buffered resident
    # weights+biases, plus live f32/bf16 intermediates.
    vmem_step = (2 * tm * D_in * xbytes
                 + 2 * tm * D_out * 4
                 + weight_bytes + bias_bytes
                 + 4 * tm * max(D_in, H1p, H2p) * 4)
    vmem_limit = int(min(3 * _vmem_capacity_bytes() // 4,
                         max(vmem_step + (2 << 20), 16 << 20)))

    kernel = functools.partial(mlp_kernel, matmul_dtype=matmul_dtype,
                               act_dtype=act_dtype)
    out_shape = jax.ShapeDtypeStruct((M, D_out), jnp.float32)

    def build(resident_mode):
        return pl.pallas_call(
            kernel,
            out_shape=out_shape,
            grid_spec=pltpu.PrefetchScalarGridSpec(
                num_scalar_prefetch=0,
                grid=grid,
                in_specs=[
                    pl.BlockSpec((tm, D_in), lambda i: (i, 0)),       # x rows
                    pl.BlockSpec((D_in, H1p), lambda i: (0, 0),
                                 pipeline_mode=resident_mode),        # w1
                    pl.BlockSpec((1, H1p), lambda i: (0, 0),
                                 pipeline_mode=resident_mode),        # b1
                    pl.BlockSpec((H1p, H2p), lambda i: (0, 0),
                                 pipeline_mode=resident_mode),        # w2
                    pl.BlockSpec((1, H2p), lambda i: (0, 0),
                                 pipeline_mode=resident_mode),        # b2
                    pl.BlockSpec((H2p, D_out), lambda i: (0, 0),
                                 pipeline_mode=resident_mode),        # w3
                    pl.BlockSpec((1, D_out), lambda i: (0, 0),
                                 pipeline_mode=resident_mode),        # b3
                ],
                out_specs=pl.BlockSpec((tm, D_out), lambda i: (i, 0)),
            ),
            compiler_params=pltpu.CompilerParams(
                dimension_semantics=("parallel",),
                vmem_limit_bytes=vmem_limit,
            ),
            cost_estimate=cost,
        )

    try:
        # Constant index maps -> single-buffer the resident weights/biases
        # (halves their VMEM footprint; matters on v7x's 64 MiB per core).
        out2d = build(pl.Buffered(1))(x2d, w1, b1, w2, b2, w3, b3)
    except Exception:
        # jax build without single-buffered pipeline_mode support: fall back
        # to default double-buffered residents (correct, just costs VMEM).
        out2d = build(None)(x2d, w1, b1, w2, b2, w3, b3)

    return out2d.reshape(B, S, D_out)


def init_params(key, input_size, hidden1, hidden2, output_size):
    """Deterministic init mimicking nn.Linear's uniform(-1/sqrt(fan_in), ...)."""
    ks = jax.random.split(key, 6)

    def linear(kw, kb, fan_in, fan_out):
        bound = 1.0 / jnp.sqrt(jnp.float32(fan_in))
        w = jax.random.uniform(kw, (fan_in, fan_out), jnp.float32, -bound, bound)
        b = jax.random.uniform(kb, (1, fan_out), jnp.float32, -bound, bound)
        return w, b

    w1, b1 = linear(ks[0], ks[1], input_size, hidden1)
    w2, b2 = linear(ks[2], ks[3], hidden1, hidden2)
    w3, b3 = linear(ks[4], ks[5], hidden2, output_size)
    return {"w1": w1, "b1": b1, "w2": w2, "b2": b2, "w3": w3, "b3": b3}


def reference_forward(x, p):
    B, S, D = x.shape
    h = jnp.tanh(x.reshape(B * S, D))
    h = jnp.tanh(h @ p["w1"] + p["b1"])
    h = jnp.tanh(h @ p["w2"] + p["b2"])
    h = jax.nn.sigmoid(h @ p["w3"] + p["b3"])
    return h.reshape(B, S, -1)


if __name__ == "__main__":
    key = jax.random.PRNGKey(0)
    k_x, k_p = jax.random.split(key)

    # Small shapes consistent with the module: (batch, seq, input_size)
    B, S = 2, 8
    input_size, hidden1, hidden2, output_size = 32, 64, 48, 16

    x = jax.random.normal(k_x, (B, S, input_size), jnp.float32)
    params = init_params(k_p, input_size, hidden1, hidden2, output_size)
    ref = reference_forward(x, params)

    # Exact-math path (f32 matmul operands + f32 activations): tight tolerance.
    prep_f32 = prepare_params(params, matmul_dtype=jnp.float32)
    out_f32 = jax.block_until_ready(mlp_forward(x, prep_f32))
    assert out_f32.shape == (B, S, output_size)
    assert jnp.allclose(out_f32, ref, atol=1e-5, rtol=1e-5), "f32 path mismatch"

    # Performance path (bf16 matmul operands / bf16-streamed x, f32 MXU
    # accumulation, bf16 activations on v6e/v7x only).
    prep_bf16 = prepare_params(params, matmul_dtype=jnp.bfloat16)
    out_bf16 = jax.block_until_ready(mlp_forward(x, prep_bf16))
    assert out_bf16.shape == (B, S, output_size)
    assert jnp.allclose(out_bf16, ref, atol=3e-2, rtol=3e-2), "bf16 path mismatch"

    print("KERNEL_OK")
</pallas_src>

<mosaic_0001>
module attributes {stable_mosaic.version = 11 : i64} {
  func.func @mlp_kernel(%arg0: i32, %arg1: memref<16x32xf32, #tpu.memory_space<vmem>>, %arg2: memref<32x128xf32, #tpu.memory_space<vmem>>, %arg3: memref<1x128xf32, #tpu.memory_space<vmem>>, %arg4: memref<128x128xf32, #tpu.memory_space<vmem>>, %arg5: memref<1x128xf32, #tpu.memory_space<vmem>>, %arg6: memref<128x16xf32, #tpu.memory_space<vmem>>, %arg7: memref<1x16xf32, #tpu.memory_space<vmem>>, %arg8: memref<16x16xf32, #tpu.memory_space<vmem>>) attributes {dimension_semantics = [#tpu.dimension_semantics<parallel>], iteration_bounds = array<i64: 1>, scalar_prefetch = 0 : i64, scratch_operands = 0 : i64, tpu.core_type = #tpu.core_type<tc>, window_params = [{transform_indices = @transform_0, window_bounds = array<i64: 16, 32>}, {pipeline_mode = #tpu.pipeline_mode<synchronous>, transform_indices = @transform_1, window_bounds = array<i64: 32, 128>}, {pipeline_mode = #tpu.pipeline_mode<synchronous>, transform_indices = @transform_2, window_bounds = array<i64: 1, 128>}, {pipeline_mode = #tpu.pipeline_mode<synchronous>, transform_indices = @transform_3, window_bounds = array<i64: 128, 128>}, {pipeline_mode = #tpu.pipeline_mode<synchronous>, transform_indices = @transform_4, window_bounds = array<i64: 1, 128>}, {pipeline_mode = #tpu.pipeline_mode<synchronous>, transform_indices = @transform_5, window_bounds = array<i64: 128, 16>}, {pipeline_mode = #tpu.pipeline_mode<synchronous>, transform_indices = @transform_6, window_bounds = array<i64: 1, 16>}, {transform_indices = @transform_7, window_bounds = array<i64: 16, 16>}]} {
    %c0 = arith.constant 0 : index
    %c0_0 = arith.constant 0 : index
    %0 = vector.load %arg1[%c0, %c0_0] : memref<16x32xf32, #tpu.memory_space<vmem>>, vector<16x32xf32>
    %1 = math.tanh %0 : vector<16x32xf32>
    %c0_1 = arith.constant 0 : index
    %c0_2 = arith.constant 0 : index
    %2 = vector.load %arg2[%c0_1, %c0_2] : memref<32x128xf32, #tpu.memory_space<vmem>>, vector<32x128xf32>
    %cst = arith.constant dense<0.000000e+00> : vector<16x128xf32>
    %3 = tpu.matmul %1, %2, %cst {dimension_numbers = #tpu.dot_dimension_numbers<[1], [0], [0], [1], [0, 0, 1, 1], [], []>} : vector<16x32xf32>, vector<32x128xf32>, vector<16x128xf32> -> vector<16x128xf32>
    %c0_3 = arith.constant 0 : index
    %c0_4 = arith.constant 0 : index
    %4 = vector.load %arg3[%c0_3, %c0_4] : memref<1x128xf32, #tpu.memory_space<vmem>>, vector<1x128xf32>
    %5 = vector.broadcast %4 : vector<1x128xf32> to vector<16x128xf32>
    %6 = arith.addf %3, %5 : vector<16x128xf32>
    %7 = math.tanh %6 : vector<16x128xf32>
    %c0_5 = arith.constant 0 : index
    %c0_6 = arith.constant 0 : index
    %8 = vector.load %arg4[%c0_5, %c0_6] : memref<128x128xf32, #tpu.memory_space<vmem>>, vector<128x128xf32>
    %cst_7 = arith.constant dense<0.000000e+00> : vector<16x128xf32>
    %9 = tpu.matmul %7, %8, %cst_7 {dimension_numbers = #tpu.dot_dimension_numbers<[1], [0], [0], [1], [0, 0, 1, 1], [], []>} : vector<16x128xf32>, vector<128x128xf32>, vector<16x128xf32> -> vector<16x128xf32>
    %c0_8 = arith.constant 0 : index
    %c0_9 = arith.constant 0 : index
    %10 = vector.load %arg5[%c0_8, %c0_9] : memref<1x128xf32, #tpu.memory_space<vmem>>, vector<1x128xf32>
    %11 = vector.broadcast %10 : vector<1x128xf32> to vector<16x128xf32>
    %12 = arith.addf %9, %11 : vector<16x128xf32>
    %13 = math.tanh %12 : vector<16x128xf32>
    %c0_10 = arith.constant 0 : index
    %c0_11 = arith.constant 0 : index
    %14 = vector.load %arg6[%c0_10, %c0_11] : memref<128x16xf32, #tpu.memory_space<vmem>>, vector<128x16xf32>
    %cst_12 = arith.constant dense<0.000000e+00> : vector<16x16xf32>
    %15 = tpu.matmul %13, %14, %cst_12 {dimension_numbers = #tpu.dot_dimension_numbers<[1], [0], [0], [1], [0, 0, 1, 1], [], []>} : vector<16x128xf32>, vector<128x16xf32>, vector<16x16xf32> -> vector<16x16xf32>
    %c0_13 = arith.constant 0 : index
    %c0_14 = arith.constant 0 : index
    %16 = vector.load %arg7[%c0_13, %c0_14] : memref<1x16xf32, #tpu.memory_space<vmem>>, vector<1x16xf32>
    %17 = vector.broadcast %16 : vector<1x16xf32> to vector<16x16xf32>
    %18 = arith.addf %15, %17 : vector<16x16xf32>
    %19 = arith.negf %18 : vector<16x16xf32>
    %20 = math.exp %19 : vector<16x16xf32>
    %cst_15 = arith.constant 1.000000e+00 : f32
    %21 = vector.broadcast %cst_15 : f32 to vector<16x16xf32>
    %22 = arith.addf %21, %20 : vector<16x16xf32>
    %23 = arith.divf %21, %22 : vector<16x16xf32>
    %c0_16 = arith.constant 0 : index
    %c0_17 = arith.constant 0 : index
    %24 = vector.load %arg8[%c0_16, %c0_17] : memref<16x16xf32, #tpu.memory_space<vmem>>, vector<16x16xf32>
    tpu.vector_store %arg8[%c0_16, %c0_17], %23 {strides = array<i32>} : memref<16x16xf32, #tpu.memory_space<vmem>>, vector<16x16xf32>,
    return
  }
  func.func @transform_0(%arg0: i32) -> (i32, i32) {
    %c0_i32 = arith.constant 0 : i32
    %c0_i32_0 = arith.constant 0 : i32
    return %arg0, %c0_i32 : i32, i32
  }
  func.func @transform_1(%arg0: i32) -> (i32, i32) {
    %c0_i32 = arith.constant 0 : i32
    %c0_i32_0 = arith.constant 0 : i32
    %c0_i32_1 = arith.constant 0 : i32
    return %c0_i32, %c0_i32_0 : i32, i32
  }
  func.func @transform_2(%arg0: i32) -> (i32, i32) {
    %c0_i32 = arith.constant 0 : i32
    %c0_i32_0 = arith.constant 0 : i32
    %c0_i32_1 = arith.constant 0 : i32
    return %c0_i32, %c0_i32_0 : i32, i32
  }
  func.func @transform_3(%arg0: i32) -> (i32, i32) {
    %c0_i32 = arith.constant 0 : i32
    %c0_i32_0 = arith.constant 0 : i32
    %c0_i32_1 = arith.constant 0 : i32
    return %c0_i32, %c0_i32_0 : i32, i32
  }
  func.func @transform_4(%arg0: i32) -> (i32, i32) {
    %c0_i32 = arith.constant 0 : i32
    %c0_i32_0 = arith.constant 0 : i32
    %c0_i32_1 = arith.constant 0 : i32
    return %c0_i32, %c0_i32_0 : i32, i32
  }
  func.func @transform_5(%arg0: i32) -> (i32, i32) {
    %c0_i32 = arith.constant 0 : i32
    %c0_i32_0 = arith.constant 0 : i32
    %c0_i32_1 = arith.constant 0 : i32
    return %c0_i32, %c0_i32_0 : i32, i32
  }
  func.func @transform_6(%arg0: i32) -> (i32, i32) {
    %c0_i32 = arith.constant 0 : i32
    %c0_i32_0 = arith.constant 0 : i32
    %c0_i32_1 = arith.constant 0 : i32
    return %c0_i32, %c0_i32_0 : i32, i32
  }
  func.func @transform_7(%arg0: i32) -> (i32, i32) {
    %c0_i32 = arith.constant 0 : i32
    %c0_i32_0 = arith.constant 0 : i32
    return %arg0, %c0_i32 : i32, i32
  }
}

module attributes {stable_mosaic.version = 11 : i64} {
  func.func @mlp_kernel(%arg0: i32, %arg1: memref<16x32xf32, #tpu.memory_space<vmem>>, %arg2: memref<32x128xf32, #tpu.memory_space<vmem>>, %arg3: memref<1x128xf32, #tpu.memory_space<vmem>>, %arg4: memref<128x128xf32, #tpu.memory_space<vmem>>, %arg5: memref<1x128xf32, #tpu.memory_space<vmem>>, %arg6: memref<128x16xf32, #tpu.memory_space<vmem>>, %arg7: memref<1x16xf32, #tpu.memory_space<vmem>>, %arg8: memref<16x16xf32, #tpu.memory_space<vmem>>) attributes {dimension_semantics = [#tpu.dimension_semantics<parallel>], iteration_bounds = array<i64: 1>, scalar_prefetch = 0 : i64, scratch_operands = 0 : i64, tpu.core_type = #tpu.core_type<tc>, window_params = [{transform_indices = @transform_0, window_bounds = array<i64: 16, 32>}, {pipeline_mode = #tpu.pipeline_mode<synchronous>, transform_indices = @transform_1, window_bounds = array<i64: 32, 128>}, {pipeline_mode = #tpu.pipeline_mode<synchronous>, transform_indices = @transform_2, window_bounds = array<i64: 1, 128>}, {pipeline_mode = #tpu.pipeline_mode<synchronous>, transform_indices = @transform_3, window_bounds = array<i64: 128, 128>}, {pipeline_mode = #tpu.pipeline_mode<synchronous>, transform_indices = @transform_4, window_bounds = array<i64: 1, 128>}, {pipeline_mode = #tpu.pipeline_mode<synchronous>, transform_indices = @transform_5, window_bounds = array<i64: 128, 16>}, {pipeline_mode = #tpu.pipeline_mode<synchronous>, transform_indices = @transform_6, window_bounds = array<i64: 1, 16>}, {transform_indices = @transform_7, window_bounds = array<i64: 16, 16>}]} {
    %c0 = arith.constant 0 : index
    %c0_0 = arith.constant 0 : index
    %0 = vector.load %arg1[%c0, %c0_0] : memref<16x32xf32, #tpu.memory_space<vmem>>, vector<16x32xf32>
    %1 = math.tanh %0 : vector<16x32xf32>
    %c0_1 = arith.constant 0 : index
    %c0_2 = arith.constant 0 : index
    %2 = vector.load %arg2[%c0_1, %c0_2] : memref<32x128xf32, #tpu.memory_space<vmem>>, vector<32x128xf32>
    %cst = arith.constant dense<0.000000e+00> : vector<16x128xf32>
    %3 = tpu.matmul %1, %2, %cst {dimension_numbers = #tpu.dot_dimension_numbers<[1], [0], [0], [1], [0, 0, 1, 1], [], []>} : vector<16x32xf32>, vector<32x128xf32>, vector<16x128xf32> -> vector<16x128xf32>
    %c0_3 = arith.constant 0 : index
    %c0_4 = arith.constant 0 : index
    %4 = vector.load %arg3[%c0_3, %c0_4] : memref<1x128xf32, #tpu.memory_space<vmem>>, vector<1x128xf32>
    %5 = vector.broadcast %4 : vector<1x128xf32> to vector<16x128xf32>
    %6 = arith.addf %3, %5 : vector<16x128xf32>
    %7 = math.tanh %6 : vector<16x128xf32>
    %c0_5 = arith.constant 0 : index
    %c0_6 = arith.constant 0 : index
    %8 = vector.load %arg4[%c0_5, %c0_6] : memref<128x128xf32, #tpu.memory_space<vmem>>, vector<128x128xf32>
    %cst_7 = arith.constant dense<0.000000e+00> : vector<16x128xf32>
    %9 = tpu.matmul %7, %8, %cst_7 {dimension_numbers = #tpu.dot_dimension_numbers<[1], [0], [0], [1], [0, 0, 1, 1], [], []>} : vector<16x128xf32>, vector<128x128xf32>, vector<16x128xf32> -> vector<16x128xf32>
    %c0_8 = arith.constant 0 : index
    %c0_9 = arith.constant 0 : index
    %10 = vector.load %arg5[%c0_8, %c0_9] : memref<1x128xf32, #tpu.memory_space<vmem>>, vector<1x128xf32>
    %11 = vector.broadcast %10 : vector<1x128xf32> to vector<16x128xf32>
    %12 = arith.addf %9, %11 : vector<16x128xf32>
    %13 = math.tanh %12 : vector<16x128xf32>
    %c0_10 = arith.constant 0 : index
    %c0_11 = arith.constant 0 : index
    %14 = vector.load %arg6[%c0_10, %c0_11] : memref<128x16xf32, #tpu.memory_space<vmem>>, vector<128x16xf32>
    %cst_12 = arith.constant dense<0.000000e+00> : vector<16x16xf32>
    %15 = tpu.matmul %13, %14, %cst_12 {dimension_numbers = #tpu.dot_dimension_numbers<[1], [0], [0], [1], [0, 0, 1, 1], [], []>} : vector<16x128xf32>, vector<128x16xf32>, vector<16x16xf32> -> vector<16x16xf32>
    %c0_13 = arith.constant 0 : index
    %c0_14 = arith.constant 0 : index
    %16 = vector.load %arg7[%c0_13, %c0_14] : memref<1x16xf32, #tpu.memory_space<vmem>>, vector<1x16xf32>
    %17 = vector.broadcast %16 : vector<1x16xf32> to vector<16x16xf32>
    %18 = arith.addf %15, %17 : vector<16x16xf32>
    %19 = arith.negf %18 : vector<16x16xf32>
    %20 = math.exp %19 : vector<16x16xf32>
    %cst_15 = arith.constant 1.000000e+00 : f32
    %21 = vector.broadcast %cst_15 : f32 to vector<16x16xf32>
    %22 = arith.addf %21, %20 : vector<16x16xf32>
    %23 = arith.divf %21, %22 : vector<16x16xf32>
    %c0_16 = arith.constant 0 : index
    %c0_17 = arith.constant 0 : index
    %24 = vector.load %arg8[%c0_16, %c0_17] : memref<16x16xf32, #tpu.memory_space<vmem>>, vector<16x16xf32>
    tpu.vector_store %arg8[%c0_16, %c0_17], %23 {strides = array<i32>} : memref<16x16xf32, #tpu.memory_space<vmem>>, vector<16x16xf32>,
    return
  }
  func.func @transform_0(%arg0: i32) -> (i32, i32) {
    %c0_i32 = arith.constant 0 : i32
    %c0_i32_0 = arith.constant 0 : i32
    return %arg0, %c0_i32 : i32, i32
  }
  func.func @transform_1(%arg0: i32) -> (i32, i32) {
    %c0_i32 = arith.constant 0 : i32
    %c0_i32_0 = arith.constant 0 : i32
    %c0_i32_1 = arith.constant 0 : i32
    return %c0_i32, %c0_i32_0 : i32, i32
  }
  func.func @transform_2(%arg0: i32) -> (i32, i32) {
    %c0_i32 = arith.constant 0 : i32
    %c0_i32_0 = arith.constant 0 : i32
    %c0_i32_1 = arith.constant 0 : i32
    return %c0_i32, %c0_i32_0 : i32, i32
  }
  func.func @transform_3(%arg0: i32) -> (i32, i32) {
    %c0_i32 = arith.constant 0 : i32
    %c0_i32_0 = arith.constant 0 : i32
    %c0_i32_1 = arith.constant 0 : i32
    return %c0_i32, %c0_i32_0 : i32, i32
  }
  func.func @transform_4(%arg0: i32) -> (i32, i32) {
    %c0_i32 = arith.constant 0 : i32
    %c0_i32_0 = arith.constant 0 : i32
    %c0_i32_1 = arith.constant 0 : i32
    return %c0_i32, %c0_i32_0 : i32, i32
  }
  func.func @transform_5(%arg0: i32) -> (i32, i32) {
    %c0_i32 = arith.constant 0 : i32
    %c0_i32_0 = arith.constant 0 : i32
    %c0_i32_1 = arith.constant 0 : i32
    return %c0_i32, %c0_i32_0 : i32, i32
  }
  func.func @transform_6(%arg0: i32) -> (i32, i32) {
    %c0_i32 = arith.constant 0 : i32
    %c0_i32_0 = arith.constant 0 : i32
    %c0_i32_1 = arith.constant 0 : i32
    return %c0_i32, %c0_i32_0 : i32, i32
  }
  func.func @transform_7(%arg0: i32) -> (i32, i32) {
    %c0_i32 = arith.constant 0 : i32
    %c0_i32_0 = arith.constant 0 : i32
    return %arg0, %c0_i32 : i32, i32
  }
}

</mosaic_0001>

<bundles_post_ra>
// kernel: tpu_custom_call.1
= control target key start
LH: loop header
LB: loop body
LE: loop exit
PB: predicated region body
PF: predicated region fallthrough
CT: control target
= control target key end

     0   :  { %12 = vsyncpa [#allocation3], 0  ;;  %s735_s0 = inlined_call_operand.vmem [shape: f32[16,32], index: 0, kind: input, shape index: {}]   ;;  %s736_s1 = inlined_call_operand.hbm [shape: f32[32,128], index: 1, kind: input, shape index: {}]   ;;  %s737_s2 = inlined_call_operand.vmem [shape: f32[1,128], index: 2, kind: input, shape index: {}]   ;;  %s738_s3 = inlined_call_operand.vmem [shape: f32[128,128], index: 3, kind: input, shape index: {}]   ;;  %s739_s4 = inlined_call_operand.vmem [shape: f32[1,128], index: 4, kind: input, shape index: {}]   ;;  %s740_s5 = inlined_call_operand.vmem [shape: f32[128,16], index: 5, kind: input, shape index: {}]   ;;  %s741_s6 = inlined_call_operand.vmem [shape: f32[1,16], index: 6, kind: input, shape index: {}]   ;;  %s742_s7 = inlined_call_operand.hbm [shape: f32[16,16], index: 7, kind: output, shape index: {}]  }
   0x1   :  { %13 = vsyncpa [#allocation4], 0  ;;  %s568_s24 = smov [#allocation2]  }
   0x2   :  { %s21_s25 = sshll.u32 %s568_s24, 4  ;;  %s22_s25 = int_to_ptr.vmem [resolvable:$true] %s21_s25 }
   0x3   :  { %s532_s26 = scalar_lea.vmem %s22_s25, 512  ;;  %p537_p1 = scmp.lt.s32.totalorder %s22_s25, %s22_s25 }
   0x4   :  { %p533_p0 = scmp.ne.s32.totalorder %s22_s25, %s532_s26  ;;  %p538_p2 = scmp.lt.s32.totalorder %s532_s26, %s532_s26 }
   0x6   :  { %p539_p3 = por %p538_p2, %p537_p1 }
   0x8   :  { %p540_p4 = pnand %p539_p3, %p533_p0 }
   0xa   :  { %543 = shalt.err (!%p540_p4)
}
   0xb   :  { %s569_s27 = smov 128   ;;  %s570_s28 = smov 8  }
   0xc   :  { %27 = dma.hbm_to_vmem [thread:$0]  %s736_s1, 512, %s22_s25, [#allocation3], %s569_s27, %s569_s27, %s570_s28  }
   0xd   :  { %564 = dma.done.wait [#allocation3], 512  }
   0xe   :  { %565 = vsyncadd [#allocation3], 4294966784  ;;  %v48_v0 = vld [vmem:[#allocation2 + $0x18] sm:$0xff]  ;;  %v47_v1 = vld [vmem:[#allocation2 + $0x10] sm:$0xff]  ;;  %vm56_vm0 = vcmask 261120   ;;  %vm350_vm1 = vcmask 130048  }
   0xf   :  { %419 = vmatprep.subr.mxu0 %v48_v0  ;;  %v41_v2 = vld [vmem:[%s735_s0] sm:$0xff]  ;;  %v42_v3 = vld [vmem:[%s735_s0 + $0x8] sm:$0xff]  ;;  %v155_v5 = vld [vmem:[%s738_s3 + $0x78] sm:$0xff] }
  0x10   :  { %420 = vmatpush3.msra.mxu0 %v48_v0  ;;  %v46_v4 = vld [vmem:[#allocation2 + $0x8] sm:$0xff]  ;;  %504 = vtanh.f32 %v41_v2  ;;  %v154_v6 = vld [vmem:[%s738_s3 + $0x70] sm:$0xff]  ;;  %430 = vmatprep.subr.mxu1 %v155_v5  ;;  %v45_v7 = vld [vmem:[#allocation2] sm:$0xff] }
  0x11   :  { %421 = vmatprep.subr.mxu0 %v47_v1  ;;  %506 = vtanh.f32 %v42_v3  ;;  %431 = vmatpush3.msra.mxu1 %v155_v5  ;;  %v153_v8 = vld [vmem:[%s738_s3 + $0x68] sm:$0xff]  ;;  %v152_v9 = vld [vmem:[%s738_s3 + $0x60] sm:$0xff]  ;;  %v151_v10 = vld [vmem:[%s738_s3 + $0x58] sm:$0xff] }
  0x12   :  { %422 = vmatpush3.msra.mxu0 %v47_v1  ;;  %432 = vmatprep.subr.mxu1 %v154_v6  ;;  %v150_v11 = vld [vmem:[%s738_s3 + $0x50] sm:$0xff]  ;;  %v149_v14 = vld [vmem:[%s738_s3 + $0x48] sm:$0xff]  ;;  %v148_v15 = vld [vmem:[%s738_s3 + $0x40] sm:$0xff] }
  0x13   :  { %423 = vmatprep.subr.mxu0 %v46_v4  ;;  %433 = vmatpush3.msra.mxu1 %v154_v6  ;;  %v147_v16 = vld [vmem:[%s738_s3 + $0x38] sm:$0xff]  ;;  %v146_v17 = vld [vmem:[%s738_s3 + $0x30] sm:$0xff]  ;;  %v145_v18 = vld [vmem:[%s738_s3 + $0x28] sm:$0xff] }
  0x14   :  { %424 = vmatpush3.msra.mxu0 %v46_v4  ;;  %434 = vmatprep.subr.mxu1 %v153_v8  ;;  %v144_v19 = vld [vmem:[%s738_s3 + $0x20] sm:$0xff]  ;;  %v143_v20 = vld [vmem:[%s738_s3 + $0x18] sm:$0xff]  ;;  %v142_v21 = vld [vmem:[%s738_s3 + $0x10] sm:$0xff] }
  0x15   :  { %425 = vmatprep.subr.mxu0 %v45_v7  ;;  %435 = vmatpush3.msra.mxu1 %v153_v8  ;;  %v141_v22 = vld [vmem:[%s738_s3 + $0x8] sm:$0xff]  ;;  %v140_v23 = vld [vmem:[%s738_s3] sm:$0xff]  ;;  %v255_v24 = vld [vmem:[%s740_s5 + $0x78] sm:$0xff] }
  0x16   :  { %426 = vmatpush3.msra.mxu0 %v45_v7  ;;  %436 = vmatprep.subr.mxu1 %v152_v9  ;;  %v254_v25 = vld [vmem:[%s740_s5 + $0x70] sm:$0xff]  ;;  %v253_v26 = vld [vmem:[%s740_s5 + $0x68] sm:$0xff]  ;;  %v252_v27 = vld [vmem:[%s740_s5 + $0x60] sm:$0xff] }
  0x17   :  { %437 = vmatpush3.msra.mxu1 %v152_v9  ;;  %465 = vmatprep.subr.mxu0 %v255_v24  ;;  %v251_v28 = vld [vmem:[%s740_s5 + $0x58] sm:$0xff]  ;;  %v250_v29 = vld [vmem:[%s740_s5 + $0x50] sm:$0xff]  ;;  %v370_v30 = vld [vmem:[%s737_s2] ss:$0 sm:$0xff] }
  0x18   :  { %438 = vmatprep.subr.mxu1 %v151_v10  ;;  %v249_v37 = vld [vmem:[%s740_s5 + $0x48] sm:$0xff]  ;;  %v248_v38 = vld [vmem:[%s740_s5 + $0x40] sm:$0xff]  ;;  %v247_v39 = vld [vmem:[%s740_s5 + $0x38] sm:$0xff] }
  0x19   :  { %439 = vmatpush3.msra.mxu1 %v151_v10  ;;  %v246_v40 = vld [vmem:[%s740_s5 + $0x30] sm:$0xff]  ;;  %v245_v41 = vld [vmem:[%s740_s5 + $0x28] sm:$0xff]  ;;  %v244_v42 = vld [vmem:[%s740_s5 + $0x20] sm:$0xff] }
  0x1a   :  { %440 = vmatprep.subr.mxu1 %v150_v11  ;;  %v243_v43 = vld [vmem:[%s740_s5 + $0x18] sm:$0xff]  ;;  %v242_v44 = vld [vmem:[%s740_s5 + $0x10] sm:$0xff]  ;;  %v241_v45 = vld [vmem:[%s740_s5 + $0x8] sm:$0xff] }
  0x1b   :  { %441 = vmatpush3.msra.mxu1 %v150_v11  ;;  %v240_v46 = vld [vmem:[%s740_s5] sm:$0xff] }
  0x1c   :  { %442 = vmatprep.subr.mxu1 %v149_v14  ;;  %v373_v47 = vld [vmem:[%s739_s4] ss:$0 sm:$0xff]  ;;  %s571_s4 = smov [#allocation5]  }
  0x1d   :  { %v505_v12 = vpop.eup %504  ;;  %443 = vmatpush3.msra.mxu1 %v149_v14  ;;  %v374_v54 = vld [vmem:[%s741_s6] ss:$0 sm:$0xff]  ;;  %s358_s9 = sshll.u32 %s571_s4, 4  ;;  %s359_s9 = int_to_ptr.vmem [resolvable:$true] %s358_s9 }
  0x1e   :  { %v507_v13 = vpop.eup %506  ;;  %427 = vmatprep.mubr.msk.f32.mxu0 %vm56_vm0, %v505_v12  ;;  %444 = vmatprep.subr.mxu1 %v148_v15  ;;  %s544_s6 = scalar_lea.vmem %s359_s9, 256  ;;  %p549_p6 = scmp.lt.s32.totalorder %s359_s9, %s359_s9 }
  0x1f   :  { %428 = vmatmul.mubr.msk.f32.vlgmr.msra.gmra.mxu0 %vm56_vm0, %v507_v13  ;;  %445 = vmatpush3.msra.mxu1 %v148_v15  ;;  %p545_p5 = scmp.ne.s32.totalorder %s359_s9, %s544_s6  ;;  %p550_p7 = scmp.lt.s32.totalorder %s544_s6, %s544_s6 }
  0x20   :  { %446 = vmatprep.subr.mxu1 %v147_v16  ;;  %466 = vmatpush3.msra.mxu0 %v255_v24 }
  0x21   :  { %447 = vmatpush3.msra.mxu1 %v147_v16  ;;  %467 = vmatprep.subr.mxu0 %v254_v25  ;;  %p551_p8 = por %p550_p7, %p549_p6 }
  0x22   :  { %448 = vmatprep.subr.mxu1 %v146_v17  ;;  %468 = vmatpush3.msra.mxu0 %v254_v25 }
  0x23   :  { %449 = vmatpush3.msra.mxu1 %v146_v17  ;;  %469 = vmatprep.subr.mxu0 %v253_v26  ;;  %p552_p9 = pnand %p551_p8, %p545_p5 }
  0x24   :  { %450 = vmatprep.subr.mxu1 %v145_v18  ;;  %470 = vmatpush3.msra.mxu0 %v253_v26 }
  0x25   :  { %451 = vmatpush3.msra.mxu1 %v145_v18  ;;  %471 = vmatprep.subr.mxu0 %v252_v27 }
  0x26   :  { %452 = vmatprep.subr.mxu1 %v144_v19  ;;  %472 = vmatpush3.msra.mxu0 %v252_v27 }
  0x27   :  { %453 = vmatpush3.msra.mxu1 %v144_v19  ;;  %473 = vmatprep.subr.mxu0 %v251_v28 }
  0x28   :  { %454 = vmatprep.subr.mxu1 %v143_v20  ;;  %474 = vmatpush3.msra.mxu0 %v251_v28 }
  0x29   :  { %455 = vmatpush3.msra.mxu1 %v143_v20  ;;  %475 = vmatprep.subr.mxu0 %v250_v29 }
  0x2a   :  { %456 = vmatprep.subr.mxu1 %v142_v21  ;;  %476 = vmatpush3.msra.mxu0 %v250_v29 }
  0x2b   :  { %457 = vmatpush3.msra.mxu1 %v142_v21  ;;  %477 = vmatprep.subr.mxu0 %v249_v37 }
  0x2c   :  { %458 = vmatprep.subr.mxu1 %v141_v22  ;;  %478 = vmatpush3.msra.mxu0 %v249_v37 }
  0x2d   :  { %459 = vmatpush3.msra.mxu1 %v141_v22  ;;  %479 = vmatprep.subr.mxu0 %v248_v38 }
  0x2e   :  { %460 = vmatprep.subr.mxu1 %v140_v23  ;;  %480 = vmatpush3.msra.mxu0 %v248_v38 }
  0x2f   :  { %461 = vmatpush3.msra.mxu1 %v140_v23  ;;  %481 = vmatprep.subr.mxu0 %v247_v39 }
  0x30   :  { %482 = vmatpush3.msra.mxu0 %v247_v39 }
  0x31   :  { %483 = vmatprep.subr.mxu0 %v246_v40 }
  0x32   :  { %484 = vmatpush3.msra.mxu0 %v246_v40 }
  0x33   :  { %485 = vmatprep.subr.mxu0 %v245_v41 }
  0x34   :  { %486 = vmatpush3.msra.mxu0 %v245_v41 }
  0x35   :  { %487 = vmatprep.subr.mxu0 %v244_v42 }
  0x36   :  { %488 = vmatpush3.msra.mxu0 %v244_v42 }
  0x37   :  { %489 = vmatprep.subr.mxu0 %v243_v43 }
  0x38   :  { %490 = vmatpush3.msra.mxu0 %v243_v43 }
  0x39   :  { %491 = vmatprep.subr.mxu0 %v242_v44 }
  0x3a   :  { %492 = vmatpush3.msra.mxu0 %v242_v44 }
  0x3b   :  { %493 = vmatprep.subr.mxu0 %v241_v45 }
  0x3c   :  { %494 = vmatpush3.msra.mxu0 %v241_v45 }
  0x3d   :  { %495 = vmatprep.subr.mxu0 %v240_v46 }
  0x3e   :  { %496 = vmatpush3.msra.mxu0 %v240_v46 }
  0xdf   :  { %v429_v31 = vpop.f32.mrf.mxu0 }
  0xe0   :  { %v135_v32 = vadd.f32 %v429_v31, %v370_v30 }
  0xe1   :  { %v129_v33 = vpop.f32.mrf.mxu0 }
  0xe2   :  { %v130_v34 = vadd.f32 %v370_v30, %v129_v33 }
  0xe4   :  { %508 = vtanh.f32 %v130_v34 }
  0xe5   :  { %510 = vtanh.f32 %v135_v32 }
  0xf1   :  { %v509_v35 = vpop.eup %508 }
  0xf2   :  { %v511_v36 = vpop.eup %510  ;;  %462 = vmatprep.mubr.f32.mxu1 %v509_v35 }
  0xf3   :  { %463 = vmatmul.mubr.f32.vlgmr.msra.gmra.mxu1 %v511_v36 }
 0x1b3   :  { %v464_v48 = vpop.f32.mrf.mxu1 }
 0x1b4   :  { %v235_v49 = vadd.f32 %v464_v48, %v373_v47 }
 0x1b5   :  { %v229_v50 = vpop.f32.mrf.mxu1 }
 0x1b6   :  { %v230_v51 = vadd.f32 %v373_v47, %v229_v50 }
 0x1b8   :  { %512 = vtanh.f32 %v230_v51 }
 0x1b9   :  { %514 = vtanh.f32 %v235_v49 }
 0x1c5   :  { %v513_v52 = vpop.eup %512 }
 0x1c6   :  { %v515_v53 = vpop.eup %514  ;;  %497 = vmatprep.mubr.f32.mxu0 %v513_v52 }
 0x1c7   :  { %498 = vmatmul.mubr.f32.vlgmr.msra.gmra.mxu0 %v515_v53 }
 0x287   :  { %v499_v55 = vpop.f32.mrf.mxu0 }
 0x288   :  { %v335_v56 = vadd.f32 %v499_v55, %v374_v54 }
 0x289   :  { %v329_v57 = vpop.f32.mrf.mxu0 }
 0x28a   :  { %v376_v58 = vmul.f32 -1.442695, %v335_v56  ;;  %v330_v59 = vadd.f32 %v374_v54, %v329_v57 }
 0x28c   :  { %516 = vpow2.f32 %v376_v58  ;;  %v375_v60 = vmul.f32 -1.442695, %v330_v59 }
 0x28e   :  { %518 = vpow2.f32 %v375_v60 }
 0x299   :  { %v517_v61 = vpop.eup %516 }
 0x29a   :  { %v345_v62 = vadd.f32 1.0, %v517_v61 }
 0x29b   :  { %v519_v63 = vpop.eup %518 }
 0x29c   :  { %520 = vrcp.f32 %v345_v62  ;;  %v344_v0 = vadd.f32 1.0, %v519_v63 }
 0x29e   :  { %522 = vrcp.f32 %v344_v0 }
 0x2a9   :  { %v521_v1 = vpop.eup %520 }
 0x2aa   :  { %352 = vst.msk [vmem:[#allocation5 + $0x8] sm:$0xff] %vm350_vm1, %v521_v1 }
 0x2ab   :  { %v523_v2 = vpop.eup %522 }
 0x2ac   :  { %351 = vst.msk [vmem:[#allocation5] sm:$0xff] %vm350_vm1, %v523_v2 }
 0x2ad   :  { %555 = shalt.err (!%p552_p9)
}
 0x2ae   :  { %364 = dma.vmem_to_hbm [thread:$0]  %s359_s9, 256, %s742_s7, [#allocation4], %s569_s27, %s569_s27, %s570_s28  }
 0x2af   :  { %566 = dma.done.wait [#allocation4], 256  }
 0x2b0   :  { %567 = vsyncadd [#allocation4], 4294967040 }
 0x2b1   :  { %368 = vsyncpa [#allocation3], 1 }
 0x2b2   :  { %369 = vsyncpa [#allocation4], 1 }

// kernel: tpu_custom_call.1
= control target key start
LH: loop header
LB: loop body
LE: loop exit
PB: predicated region body
PF: predicated region fallthrough
CT: control target
= control target key end

     0   :  { %12 = vsyncpa [#allocation3], 0  ;;  %s735_s0 = inlined_call_operand.vmem [shape: f32[16,32], index: 0, kind: input, shape index: {}]   ;;  %s736_s1 = inlined_call_operand.hbm [shape: f32[32,128], index: 1, kind: input, shape index: {}]   ;;  %s737_s2 = inlined_call_operand.vmem [shape: f32[1,128], index: 2, kind: input, shape index: {}]   ;;  %s738_s3 = inlined_call_operand.vmem [shape: f32[128,128], index: 3, kind: input, shape index: {}]   ;;  %s739_s4 = inlined_call_operand.vmem [shape: f32[1,128], index: 4, kind: input, shape index: {}]   ;;  %s740_s5 = inlined_call_operand.vmem [shape: f32[128,16], index: 5, kind: input, shape index: {}]   ;;  %s741_s6 = inlined_call_operand.vmem [shape: f32[1,16], index: 6, kind: input, shape index: {}]   ;;  %s742_s7 = inlined_call_operand.hbm [shape: f32[16,16], index: 7, kind: output, shape index: {}]  }
   0x1   :  { %13 = vsyncpa [#allocation4], 0  ;;  %s568_s24 = smov [#allocation2]  }
   0x2   :  { %s21_s25 = sshll.u32 %s568_s24, 4  ;;  %s22_s25 = int_to_ptr.vmem [resolvable:$true] %s21_s25 }
   0x3   :  { %s532_s26 = scalar_lea.vmem %s22_s25, 512  ;;  %p537_p1 = scmp.lt.s32.totalorder %s22_s25, %s22_s25 }
   0x4   :  { %p533_p0 = scmp.ne.s32.totalorder %s22_s25, %s532_s26  ;;  %p538_p2 = scmp.lt.s32.totalorder %s532_s26, %s532_s26 }
   0x6   :  { %p539_p3 = por %p538_p2, %p537_p1 }
   0x8   :  { %p540_p4 = pnand %p539_p3, %p533_p0 }
   0xa   :  { %543 = shalt.err (!%p540_p4)
}
   0xb   :  { %s569_s27 = smov 128   ;;  %s570_s28 = smov 8  }
   0xc   :  { %27 = dma.hbm_to_vmem [thread:$0]  %s736_s1, 512, %s22_s25, [#allocation3], %s569_s27, %s569_s27, %s570_s28  }
   0xd   :  { %564 = dma.done.wait [#allocation3], 512  }
   0xe   :  { %565 = vsyncadd [#allocation3], 4294966784  ;;  %v48_v0 = vld [vmem:[#allocation2 + $0x18] sm:$0xff]  ;;  %v47_v1 = vld [vmem:[#allocation2 + $0x10] sm:$0xff]  ;;  %vm56_vm0 = vcmask 261120   ;;  %vm350_vm1 = vcmask 130048  }
   0xf   :  { %419 = vmatprep.subr.mxu0 %v48_v0  ;;  %v41_v2 = vld [vmem:[%s735_s0] sm:$0xff]  ;;  %v42_v3 = vld [vmem:[%s735_s0 + $0x8] sm:$0xff]  ;;  %v155_v5 = vld [vmem:[%s738_s3 + $0x78] sm:$0xff] }
  0x10   :  { %420 = vmatpush3.msra.mxu0 %v48_v0  ;;  %v46_v4 = vld [vmem:[#allocation2 + $0x8] sm:$0xff]  ;;  %504 = vtanh.f32 %v41_v2  ;;  %v154_v6 = vld [vmem:[%s738_s3 + $0x70] sm:$0xff]  ;;  %430 = vmatprep.subr.mxu1 %v155_v5  ;;  %v45_v7 = vld [vmem:[#allocation2] sm:$0xff] }
  0x11   :  { %421 = vmatprep.subr.mxu0 %v47_v1  ;;  %506 = vtanh.f32 %v42_v3  ;;  %431 = vmatpush3.msra.mxu1 %v155_v5  ;;  %v153_v8 = vld [vmem:[%s738_s3 + $0x68] sm:$0xff]  ;;  %v152_v9 = vld [vmem:[%s738_s3 + $0x60] sm:$0xff]  ;;  %v151_v10 = vld [vmem:[%s738_s3 + $0x58] sm:$0xff] }
  0x12   :  { %422 = vmatpush3.msra.mxu0 %v47_v1  ;;  %432 = vmatprep.subr.mxu1 %v154_v6  ;;  %v150_v11 = vld [vmem:[%s738_s3 + $0x50] sm:$0xff]  ;;  %v149_v14 = vld [vmem:[%s738_s3 + $0x48] sm:$0xff]  ;;  %v148_v15 = vld [vmem:[%s738_s3 + $0x40] sm:$0xff] }
  0x13   :  { %423 = vmatprep.subr.mxu0 %v46_v4  ;;  %433 = vmatpush3.msra.mxu1 %v154_v6  ;;  %v147_v16 = vld [vmem:[%s738_s3 + $0x38] sm:$0xff]  ;;  %v146_v17 = vld [vmem:[%s738_s3 + $0x30] sm:$0xff]  ;;  %v145_v18 = vld [vmem:[%s738_s3 + $0x28] sm:$0xff] }
  0x14   :  { %424 = vmatpush3.msra.mxu0 %v46_v4  ;;  %434 = vmatprep.subr.mxu1 %v153_v8  ;;  %v144_v19 = vld [vmem:[%s738_s3 + $0x20] sm:$0xff]  ;;  %v143_v20 = vld [vmem:[%s738_s3 + $0x18] sm:$0xff]  ;;  %v142_v21 = vld [vmem:[%s738_s3 + $0x10] sm:$0xff] }
  0x15   :  { %425 = vmatprep.subr.mxu0 %v45_v7  ;;  %435 = vmatpush3.msra.mxu1 %v153_v8  ;;  %v141_v22 = vld [vmem:[%s738_s3 + $0x8] sm:$0xff]  ;;  %v140_v23 = vld [vmem:[%s738_s3] sm:$0xff]  ;;  %v255_v24 = vld [vmem:[%s740_s5 + $0x78] sm:$0xff] }
  0x16   :  { %426 = vmatpush3.msra.mxu0 %v45_v7  ;;  %436 = vmatprep.subr.mxu1 %v152_v9  ;;  %v254_v25 = vld [vmem:[%s740_s5 + $0x70] sm:$0xff]  ;;  %v253_v26 = vld [vmem:[%s740_s5 + $0x68] sm:$0xff]  ;;  %v252_v27 = vld [vmem:[%s740_s5 + $0x60] sm:$0xff] }
  0x17   :  { %437 = vmatpush3.msra.mxu1 %v152_v9  ;;  %465 = vmatprep.subr.mxu0 %v255_v24  ;;  %v251_v28 = vld [vmem:[%s740_s5 + $0x58] sm:$0xff]  ;;  %v250_v29 = vld [vmem:[%s740_s5 + $0x50] sm:$0xff]  ;;  %v370_v30 = vld [vmem:[%s737_s2] ss:$0 sm:$0xff] }
  0x18   :  { %438 = vmatprep.subr.mxu1 %v151_v10  ;;  %v249_v37 = vld [vmem:[%s740_s5 + $0x48] sm:$0xff]  ;;  %v248_v38 = vld [vmem:[%s740_s5 + $0x40] sm:$0xff]  ;;  %v247_v39 = vld [vmem:[%s740_s5 + $0x38] sm:$0xff] }
  0x19   :  { %439 = vmatpush3.msra.mxu1 %v151_v10  ;;  %v246_v40 = vld [vmem:[%s740_s5 + $0x30] sm:$0xff]  ;;  %v245_v41 = vld [vmem:[%s740_s5 + $0x28] sm:$0xff]  ;;  %v244_v42 = vld [vmem:[%s740_s5 + $0x20] sm:$0xff] }
  0x1a   :  { %440 = vmatprep.subr.mxu1 %v150_v11  ;;  %v243_v43 = vld [vmem:[%s740_s5 + $0x18] sm:$0xff]  ;;  %v242_v44 = vld [vmem:[%s740_s5 + $0x10] sm:$0xff]  ;;  %v241_v45 = vld [vmem:[%s740_s5 + $0x8] sm:$0xff] }
  0x1b   :  { %441 = vmatpush3.msra.mxu1 %v150_v11  ;;  %v240_v46 = vld [vmem:[%s740_s5] sm:$0xff] }
  0x1c   :  { %442 = vmatprep.subr.mxu1 %v149_v14  ;;  %v373_v47 = vld [vmem:[%s739_s4] ss:$0 sm:$0xff]  ;;  %s571_s4 = smov [#allocation5]  }
  0x1d   :  { %v505_v12 = vpop.eup %504  ;;  %443 = vmatpush3.msra.mxu1 %v149_v14  ;;  %v374_v54 = vld [vmem:[%s741_s6] ss:$0 sm:$0xff]  ;;  %s358_s9 = sshll.u32 %s571_s4, 4  ;;  %s359_s9 = int_to_ptr.vmem [resolvable:$true] %s358_s9 }
  0x1e   :  { %v507_v13 = vpop.eup %506  ;;  %427 = vmatprep.mubr.msk.f32.mxu0 %vm56_vm0, %v505_v12  ;;  %444 = vmatprep.subr.mxu1 %v148_v15  ;;  %s544_s6 = scalar_lea.vmem %s359_s9, 256  ;;  %p549_p6 = scmp.lt.s32.totalorder %s359_s9, %s359_s9 }
  0x1f   :  { %428 = vmatmul.mubr.msk.f32.vlgmr.msra.gmra.mxu0 %vm56_vm0, %v507_v13  ;;  %445 = vmatpush3.msra.mxu1 %v148_v15  ;;  %p545_p5 = scmp.ne.s32.totalorder %s359_s9, %s544_s6  ;;  %p550_p7 = scmp.lt.s32.totalorder %s544_s6, %s544_s6 }
  0x20   :  { %446 = vmatprep.subr.mxu1 %v147_v16  ;;  %466 = vmatpush3.msra.mxu0 %v255_v24 }
  0x21   :  { %447 = vmatpush3.msra.mxu1 %v147_v16  ;;  %467 = vmatprep.subr.mxu0 %v254_v25  ;;  %p551_p8 = por %p550_p7, %p549_p6 }
  0x22   :  { %448 = vmatprep.subr.mxu1 %v146_v17  ;;  %468 = vmatpush3.msra.mxu0 %v254_v25 }
  0x23   :  { %449 = vmatpush3.msra.mxu1 %v146_v17  ;;  %469 = vmatprep.subr.mxu0 %v253_v26  ;;  %p552_p9 = pnand %p551_p8, %p545_p5 }
  0x24   :  { %450 = vmatprep.subr.mxu1 %v145_v18  ;;  %470 = vmatpush3.msra.mxu0 %v253_v26 }
  0x25   :  { %451 = vmatpush3.msra.mxu1 %v145_v18  ;;  %471 = vmatprep.subr.mxu0 %v252_v27 }
  0x26   :  { %452 = vmatprep.subr.mxu1 %v144_v19  ;;  %472 = vmatpush3.msra.mxu0 %v252_v27 }
  0x27   :  { %453 = vmatpush3.msra.mxu1 %v144_v19  ;;  %473 = vmatprep.subr.mxu0 %v251_v28 }
  0x28   :  { %454 = vmatprep.subr.mxu1 %v143_v20  ;;  %474 = vmatpush3.msra.mxu0 %v251_v28 }
  0x29   :  { %455 = vmatpush3.msra.mxu1 %v143_v20  ;;  %475 = vmatprep.subr.mxu0 %v250_v29 }
  0x2a   :  { %456 = vmatprep.subr.mxu1 %v142_v21  ;;  %476 = vmatpush3.msra.mxu0 %v250_v29 }
  0x2b   :  { %457 = vmatpush3.msra.mxu1 %v142_v21  ;;  %477 = vmatprep.subr.mxu0 %v249_v37 }
  0x2c   :  { %458 = vmatprep.subr.mxu1 %v141_v22  ;;  %478 = vmatpush3.msra.mxu0 %v249_v37 }
  0x2d   :  { %459 = vmatpush3.msra.mxu1 %v141_v22  ;;  %479 = vmatprep.subr.mxu0 %v248_v38 }
  0x2e   :  { %460 = vmatprep.subr.mxu1 %v140_v23  ;;  %480 = vmatpush3.msra.mxu0 %v248_v38 }
  0x2f   :  { %461 = vmatpush3.msra.mxu1 %v140_v23  ;;  %481 = vmatprep.subr.mxu0 %v247_v39 }
  0x30   :  { %482 = vmatpush3.msra.mxu0 %v247_v39 }
  0x31   :  { %483 = vmatprep.subr.mxu0 %v246_v40 }
  0x32   :  { %484 = vmatpush3.msra.mxu0 %v246_v40 }
  0x33   :  { %485 = vmatprep.subr.mxu0 %v245_v41 }
  0x34   :  { %486 = vmatpush3.msra.mxu0 %v245_v41 }
  0x35   :  { %487 = vmatprep.subr.mxu0 %v244_v42 }
  0x36   :  { %488 = vmatpush3.msra.mxu0 %v244_v42 }
  0x37   :  { %489 = vmatprep.subr.mxu0 %v243_v43 }
  0x38   :  { %490 = vmatpush3.msra.mxu0 %v243_v43 }
  0x39   :  { %491 = vmatprep.subr.mxu0 %v242_v44 }
  0x3a   :  { %492 = vmatpush3.msra.mxu0 %v242_v44 }
  0x3b   :  { %493 = vmatprep.subr.mxu0 %v241_v45 }
  0x3c   :  { %494 = vmatpush3.msra.mxu0 %v241_v45 }
  0x3d   :  { %495 = vmatprep.subr.mxu0 %v240_v46 }
  0x3e   :  { %496 = vmatpush3.msra.mxu0 %v240_v46 }
  0xdf   :  { %v429_v31 = vpop.f32.mrf.mxu0 }
  0xe0   :  { %v135_v32 = vadd.f32 %v429_v31, %v370_v30 }
  0xe1   :  { %v129_v33 = vpop.f32.mrf.mxu0 }
  0xe2   :  { %v130_v34 = vadd.f32 %v370_v30, %v129_v33 }
  0xe4   :  { %508 = vtanh.f32 %v130_v34 }
  0xe5   :  { %510 = vtanh.f32 %v135_v32 }
  0xf1   :  { %v509_v35 = vpop.eup %508 }
  0xf2   :  { %v511_v36 = vpop.eup %510  ;;  %462 = vmatprep.mubr.f32.mxu1 %v509_v35 }
  0xf3   :  { %463 = vmatmul.mubr.f32.vlgmr.msra.gmra.mxu1 %v511_v36 }
 0x1b3   :  { %v464_v48 = vpop.f32.mrf.mxu1 }
 0x1b4   :  { %v235_v49 = vadd.f32 %v464_v48, %v373_v47 }
 0x1b5   :  { %v229_v50 = vpop.f32.mrf.mxu1 }
 0x1b6   :  { %v230_v51 = vadd.f32 %v373_v47, %v229_v50 }
 0x1b8   :  { %512 = vtanh.f32 %v230_v51 }
 0x1b9   :  { %514 = vtanh.f32 %v235_v49 }
 0x1c5   :  { %v513_v52 = vpop.eup %512 }
 0x1c6   :  { %v515_v53 = vpop.eup %514  ;;  %497 = vmatprep.mubr.f32.mxu0 %v513_v52 }
 0x1c7   :  { %498 = vmatmul.mubr.f32.vlgmr.msra.gmra.mxu0 %v515_v53 }
 0x287   :  { %v499_v55 = vpop.f32.mrf.mxu0 }
 0x288   :  { %v335_v56 = vadd.f32 %v499_v55, %v374_v54 }
 0x289   :  { %v329_v57 = vpop.f32.mrf.mxu0 }
 0x28a   :  { %v376_v58 = vmul.f32 -1.442695, %v335_v56  ;;  %v330_v59 = vadd.f32 %v374_v54, %v329_v57 }
 0x28c   :  { %516 = vpow2.f32 %v376_v58  ;;  %v375_v60 = vmul.f32 -1.442695, %v330_v59 }
 0x28e   :  { %518 = vpow2.f32 %v375_v60 }
 0x299   :  { %v517_v61 = vpop.eup %516 }
 0x29a   :  { %v345_v62 = vadd.f32 1.0, %v517_v61 }
 0x29b   :  { %v519_v63 = vpop.eup %518 }
 0x29c   :  { %520 = vrcp.f32 %v345_v62  ;;  %v344_v0 = vadd.f32 1.0, %v519_v63 }
 0x29e   :  { %522 = vrcp.f32 %v344_v0 }
 0x2a9   :  { %v521_v1 = vpop.eup %520 }
 0x2aa   :  { %352 = vst.msk [vmem:[#allocation5 + $0x8] sm:$0xff] %vm350_vm1, %v521_v1 }
 0x2ab   :  { %v523_v2 = vpop.eup %522 }
 0x2ac   :  { %351 = vst.msk [vmem:[#allocation5] sm:$0xff] %vm350_vm1, %v523_v2 }
 0x2ad   :  { %555 = shalt.err (!%p552_p9)
}
 0x2ae   :  { %364 = dma.vmem_to_hbm [thread:$0]  %s359_s9, 256, %s742_s7, [#allocation4], %s569_s27, %s569_s27, %s570_s28  }
 0x2af   :  { %566 = dma.done.wait [#allocation4], 256  }
 0x2b0   :  { %567 = vsyncadd [#allocation4], 4294967040 }
 0x2b1   :  { %368 = vsyncpa [#allocation3], 1 }
 0x2b2   :  { %369 = vsyncpa [#allocation4], 1 }

</bundles_post_ra>
